<compile_context>
chip_gen: v7x
topology: tpu7x:2x2x1
jax: 0.10.0
libtpu: 0.0.40
codegen_flags: <defaults>
</compile_context>

<pallas_src>
import jax
import jax.numpy as jnp
from jax.experimental import pallas as pl
from jax.experimental.pallas import tpu as pltpu

D_IN = 28 ** 2   # 784
HID = 128        # hidden width padded 100 -> 128
LANE = 128       # lane-dense padded output width (real outputs = 10)
OUT = 10


def mlp_kernel(x_ref, w1_ref, b1_ref, w2_ref, b2_ref, w3_ref, b3_ref, o_ref):
    # x arrives f32 from HBM; cast to bf16 in-vreg (no extra wrapper HBM pass).
    x_bf = x_ref[...].astype(jnp.bfloat16)

    # layer 1: (TB,784) @ (784,128) + (1,128) -> relu   (f32 accumulation)
    h1 = jnp.dot(x_bf, w1_ref[...],
                 preferred_element_type=jnp.float32) + b1_ref[...]
    h1 = jnp.maximum(h1, 0.0)

    # layer 2: (TB,128) @ (128,128) + (1,128) -> relu
    h2 = jnp.dot(h1.astype(jnp.bfloat16), w2_ref[...],
                 preferred_element_type=jnp.float32) + b2_ref[...]
    h2 = jnp.maximum(h2, 0.0)

    # layer 3: (TB,128) @ (128,128 padded) + (1,128) -> relu, bf16 lane-dense store
    h3 = jnp.dot(h2.astype(jnp.bfloat16), w3_ref[...],
                 preferred_element_type=jnp.float32) + b3_ref[...]
    o_ref[...] = jnp.maximum(h3, 0.0).astype(o_ref.dtype)


def _round_up(x, m):
    return ((x + m - 1) // m) * m


def prepare_params(w1, b1, w2, b2, w3, b3):
    """One-time (off the hot path) zero-pad to 128-wide hidden/output lanes and
    cast matmul operands to bf16.  Weights are (in, out); biases (1, out)."""
    def pad_w(w, rows, cols):
        return jnp.pad(w, ((0, rows - w.shape[0]),
                           (0, cols - w.shape[1]))).astype(jnp.bfloat16)

    def pad_b(b, cols):
        return jnp.pad(b, ((0, 0), (0, cols - b.shape[1]))).astype(jnp.float32)

    return (pad_w(w1, D_IN, HID), pad_b(b1, HID),
            pad_w(w2, HID, HID), pad_b(b2, HID),
            pad_w(w3, HID, LANE), pad_b(b3, LANE))


def net_forward(x, prepped_params, *, tb=1024, unpad=True):
    """x: (B, 784) f32.  prepped_params: output of prepare_params()."""
    B, d_in = x.shape
    w1p, b1p, w2p, b2p, w3p, b3p = prepped_params

    # Batch tile: multiple of 16 (bf16 output sublane packing), default 1024.
    TB = min(tb, _round_up(B, 16))
    TB = _round_up(TB, 16)
    Bp = pl.cdiv(B, TB) * TB
    if Bp != B:
        x = jnp.pad(x, ((0, Bp - B), (0, 0)))

    grid = (Bp // TB,)
    const = lambda i: (0, 0)  # weights/biases: DMA'd once, stay VMEM-resident

    grid_spec = pl.GridSpec(
        grid=grid,
        in_specs=[
            pl.BlockSpec((TB, d_in), lambda i: (i, 0)),   # x tile, pipelined
            pl.BlockSpec(w1p.shape, const),
            pl.BlockSpec(b1p.shape, const),
            pl.BlockSpec(w2p.shape, const),
            pl.BlockSpec(b2p.shape, const),
            pl.BlockSpec(w3p.shape, const),
            pl.BlockSpec(b3p.shape, const),
        ],
        out_specs=pl.BlockSpec((TB, LANE), lambda i: (i, 0)),
    )

    out_padded = pl.pallas_call(
        mlp_kernel,
        out_shape=jax.ShapeDtypeStruct((Bp, LANE), jnp.bfloat16),
        grid_spec=grid_spec,
        compiler_params=pltpu.CompilerParams(
            dimension_semantics=("parallel",),   # megacore-shardable batch axis
            vmem_limit_bytes=32 * 1024 * 1024,   # covers f32 x tiles on v5e too
        ),
    )(x, w1p, b1p, w2p, b2p, w3p, b3p)

    if unpad:
        # For minimum HBM traffic pass unpad=False and let the consumer mask
        # rows >= B and lanes >= 10 (they are garbage / zero respectively).
        return out_padded[:B, :OUT]
    return out_padded


def init_params(key):
    """Deterministic init mimicking nn.Linear's U(-1/sqrt(fan_in), 1/sqrt(fan_in)).
    Weights stored transposed as (in, out); biases as (1, out)."""
    dims = [(D_IN, 100), (100, 100), (100, OUT)]
    params = []
    for (fan_in, fan_out) in dims:
        key, kw, kb = jax.random.split(key, 3)
        bound = 1.0 / jnp.sqrt(jnp.float32(fan_in))
        w = jax.random.uniform(kw, (fan_in, fan_out), jnp.float32, -bound, bound)
        b = jax.random.uniform(kb, (1, fan_out), jnp.float32, -bound, bound)
        params += [w, b]
    return params


def reference_forward(x, w1, b1, w2, b2, w3, b3):
    """Pure-JAX reference mirroring the kernel's bf16-in / f32-accumulate scheme
    and final bf16 output cast."""
    bf = jnp.bfloat16
    h = jnp.maximum(jnp.dot(x.astype(bf), w1.astype(bf),
                            preferred_element_type=jnp.float32) + b1, 0.0)
    h = jnp.maximum(jnp.dot(h.astype(bf), w2.astype(bf),
                            preferred_element_type=jnp.float32) + b2, 0.0)
    h = jnp.maximum(jnp.dot(h.astype(bf), w3.astype(bf),
                            preferred_element_type=jnp.float32) + b3, 0.0)
    return h.astype(bf)


if __name__ == "__main__":
    key = jax.random.PRNGKey(0)
    key, kx = jax.random.split(key)

    # Small correctness demo: B=200 with tb=64 exercises a multi-step pipelined
    # grid plus the ragged-batch padding path (200 -> 256 rows).  For perf use
    # the default tb=1024.
    B = 200
    x = jax.random.normal(kx, (B, D_IN), jnp.float32)

    w1, b1, w2, b2, w3, b3 = init_params(key)
    prepped = prepare_params(w1, b1, w2, b2, w3, b3)   # one-time, off hot path

    out = net_forward(x, prepped, tb=64)
    out = jax.block_until_ready(out)

    ref = reference_forward(x, w1, b1, w2, b2, w3, b3)
    assert out.shape == (B, OUT), out.shape
    assert jnp.allclose(out.astype(jnp.float32), ref.astype(jnp.float32),
                        atol=1e-2, rtol=1e-2), "mismatch vs pure-JAX reference"

    print("KERNEL_OK")
</pallas_src>

<mosaic_0001>
module attributes {stable_mosaic.version = 11 : i64} {
  func.func @mlp_kernel(%arg0: i32, %arg1: memref<64x784xf32, #tpu.memory_space<vmem>>, %arg2: memref<784x128xbf16, #tpu.memory_space<vmem>>, %arg3: memref<1x128xf32, #tpu.memory_space<vmem>>, %arg4: memref<128x128xbf16, #tpu.memory_space<vmem>>, %arg5: memref<1x128xf32, #tpu.memory_space<vmem>>, %arg6: memref<128x128xbf16, #tpu.memory_space<vmem>>, %arg7: memref<1x128xf32, #tpu.memory_space<vmem>>, %arg8: memref<64x128xbf16, #tpu.memory_space<vmem>>) attributes {dimension_semantics = [#tpu.dimension_semantics<parallel>], iteration_bounds = array<i64: 4>, scalar_prefetch = 0 : i64, scratch_operands = 0 : i64, tpu.core_type = #tpu.core_type<tc>, window_params = [{transform_indices = @transform_0, window_bounds = array<i64: 64, 784>}, {pipeline_mode = #tpu.pipeline_mode<synchronous>, transform_indices = @transform_1, window_bounds = array<i64: 784, 128>}, {pipeline_mode = #tpu.pipeline_mode<synchronous>, transform_indices = @transform_2, window_bounds = array<i64: 1, 128>}, {pipeline_mode = #tpu.pipeline_mode<synchronous>, transform_indices = @transform_3, window_bounds = array<i64: 128, 128>}, {pipeline_mode = #tpu.pipeline_mode<synchronous>, transform_indices = @transform_4, window_bounds = array<i64: 1, 128>}, {pipeline_mode = #tpu.pipeline_mode<synchronous>, transform_indices = @transform_5, window_bounds = array<i64: 128, 128>}, {pipeline_mode = #tpu.pipeline_mode<synchronous>, transform_indices = @transform_6, window_bounds = array<i64: 1, 128>}, {transform_indices = @transform_7, window_bounds = array<i64: 64, 128>}]} {
    %c0 = arith.constant 0 : index
    %c0_0 = arith.constant 0 : index
    %0 = vector.load %arg1[%c0, %c0_0] : memref<64x784xf32, #tpu.memory_space<vmem>>, vector<64x784xf32>
    %1 = arith.truncf %0 : vector<64x784xf32> to vector<64x784xbf16>
    %c0_1 = arith.constant 0 : index
    %c0_2 = arith.constant 0 : index
    %2 = vector.load %arg2[%c0_1, %c0_2] : memref<784x128xbf16, #tpu.memory_space<vmem>>, vector<784x128xbf16>
    %cst = arith.constant dense<0.000000e+00> : vector<64x128xf32>
    %3 = tpu.matmul %1, %2, %cst {dimension_numbers = #tpu.dot_dimension_numbers<[1], [0], [0], [1], [0, 0, 1, 1], [], []>} : vector<64x784xbf16>, vector<784x128xbf16>, vector<64x128xf32> -> vector<64x128xf32>
    %c0_3 = arith.constant 0 : index
    %c0_4 = arith.constant 0 : index
    %4 = vector.load %arg3[%c0_3, %c0_4] : memref<1x128xf32, #tpu.memory_space<vmem>>, vector<1x128xf32>
    %5 = vector.broadcast %4 : vector<1x128xf32> to vector<64x128xf32>
    %6 = arith.addf %3, %5 : vector<64x128xf32>
    %cst_5 = arith.constant 0.000000e+00 : f32
    %7 = vector.broadcast %cst_5 : f32 to vector<64x128xf32>
    %8 = arith.maximumf %6, %7 : vector<64x128xf32>
    %9 = arith.truncf %8 : vector<64x128xf32> to vector<64x128xbf16>
    %c0_6 = arith.constant 0 : index
    %c0_7 = arith.constant 0 : index
    %10 = vector.load %arg4[%c0_6, %c0_7] : memref<128x128xbf16, #tpu.memory_space<vmem>>, vector<128x128xbf16>
    %cst_8 = arith.constant dense<0.000000e+00> : vector<64x128xf32>
    %11 = tpu.matmul %9, %10, %cst_8 {dimension_numbers = #tpu.dot_dimension_numbers<[1], [0], [0], [1], [0, 0, 1, 1], [], []>} : vector<64x128xbf16>, vector<128x128xbf16>, vector<64x128xf32> -> vector<64x128xf32>
    %c0_9 = arith.constant 0 : index
    %c0_10 = arith.constant 0 : index
    %12 = vector.load %arg5[%c0_9, %c0_10] : memref<1x128xf32, #tpu.memory_space<vmem>>, vector<1x128xf32>
    %13 = vector.broadcast %12 : vector<1x128xf32> to vector<64x128xf32>
    %14 = arith.addf %11, %13 : vector<64x128xf32>
    %cst_11 = arith.constant 0.000000e+00 : f32
    %15 = vector.broadcast %cst_11 : f32 to vector<64x128xf32>
    %16 = arith.maximumf %14, %15 : vector<64x128xf32>
    %17 = arith.truncf %16 : vector<64x128xf32> to vector<64x128xbf16>
    %c0_12 = arith.constant 0 : index
    %c0_13 = arith.constant 0 : index
    %18 = vector.load %arg6[%c0_12, %c0_13] : memref<128x128xbf16, #tpu.memory_space<vmem>>, vector<128x128xbf16>
    %cst_14 = arith.constant dense<0.000000e+00> : vector<64x128xf32>
    %19 = tpu.matmul %17, %18, %cst_14 {dimension_numbers = #tpu.dot_dimension_numbers<[1], [0], [0], [1], [0, 0, 1, 1], [], []>} : vector<64x128xbf16>, vector<128x128xbf16>, vector<64x128xf32> -> vector<64x128xf32>
    %c0_15 = arith.constant 0 : index
    %c0_16 = arith.constant 0 : index
    %20 = vector.load %arg7[%c0_15, %c0_16] : memref<1x128xf32, #tpu.memory_space<vmem>>, vector<1x128xf32>
    %21 = vector.broadcast %20 : vector<1x128xf32> to vector<64x128xf32>
    %22 = arith.addf %19, %21 : vector<64x128xf32>
    %cst_17 = arith.constant 0.000000e+00 : f32
    %23 = vector.broadcast %cst_17 : f32 to vector<64x128xf32>
    %24 = arith.maximumf %22, %23 : vector<64x128xf32>
    %25 = arith.truncf %24 : vector<64x128xf32> to vector<64x128xbf16>
    %c0_18 = arith.constant 0 : index
    %c0_19 = arith.constant 0 : index
    %26 = vector.load %arg8[%c0_18, %c0_19] : memref<64x128xbf16, #tpu.memory_space<vmem>>, vector<64x128xbf16>
    tpu.vector_store %arg8[%c0_18, %c0_19], %25 {strides = array<i32>} : memref<64x128xbf16, #tpu.memory_space<vmem>>, vector<64x128xbf16>,
    return
  }
  func.func @transform_0(%arg0: i32) -> (i32, i32) {
    %c0_i32 = arith.constant 0 : i32
    %c0_i32_0 = arith.constant 0 : i32
    return %arg0, %c0_i32 : i32, i32
  }
  func.func @transform_1(%arg0: i32) -> (i32, i32) {
    %c0_i32 = arith.constant 0 : i32
    %c0_i32_0 = arith.constant 0 : i32
    %c0_i32_1 = arith.constant 0 : i32
    return %c0_i32, %c0_i32_0 : i32, i32
  }
  func.func @transform_2(%arg0: i32) -> (i32, i32) {
    %c0_i32 = arith.constant 0 : i32
    %c0_i32_0 = arith.constant 0 : i32
    %c0_i32_1 = arith.constant 0 : i32
    return %c0_i32, %c0_i32_0 : i32, i32
  }
  func.func @transform_3(%arg0: i32) -> (i32, i32) {
    %c0_i32 = arith.constant 0 : i32
    %c0_i32_0 = arith.constant 0 : i32
    %c0_i32_1 = arith.constant 0 : i32
    return %c0_i32, %c0_i32_0 : i32, i32
  }
  func.func @transform_4(%arg0: i32) -> (i32, i32) {
    %c0_i32 = arith.constant 0 : i32
    %c0_i32_0 = arith.constant 0 : i32
    %c0_i32_1 = arith.constant 0 : i32
    return %c0_i32, %c0_i32_0 : i32, i32
  }
  func.func @transform_5(%arg0: i32) -> (i32, i32) {
    %c0_i32 = arith.constant 0 : i32
    %c0_i32_0 = arith.constant 0 : i32
    %c0_i32_1 = arith.constant 0 : i32
    return %c0_i32, %c0_i32_0 : i32, i32
  }
  func.func @transform_6(%arg0: i32) -> (i32, i32) {
    %c0_i32 = arith.constant 0 : i32
    %c0_i32_0 = arith.constant 0 : i32
    %c0_i32_1 = arith.constant 0 : i32
    return %c0_i32, %c0_i32_0 : i32, i32
  }
  func.func @transform_7(%arg0: i32) -> (i32, i32) {
    %c0_i32 = arith.constant 0 : i32
    %c0_i32_0 = arith.constant 0 : i32
    return %arg0, %c0_i32 : i32, i32
  }
}

</mosaic_0001>

<bundles_post_ra>
// kernel: tpu_custom_call.1
= control target key start
LH: loop header
LB: loop body
LE: loop exit
PB: predicated region body
PF: predicated region fallthrough
CT: control target
= control target key end

     0   :  { %12 = vsyncpa [#allocation3], 0  ;;  %s2377_s0 = inlined_call_operand.vmem [shape: f32[256,784], index: 0, kind: input, shape index: {}]   ;;  %s2378_s1 = inlined_call_operand.vmem [shape: bf16[784,128], index: 1, kind: input, shape index: {}]   ;;  %s2379_s2 = inlined_call_operand.vmem [shape: f32[1,128], index: 2, kind: input, shape index: {}]   ;;  %s2380_s3 = inlined_call_operand.vmem [shape: bf16[128,128], index: 3, kind: input, shape index: {}]   ;;  %s2381_s4 = inlined_call_operand.vmem [shape: f32[1,128], index: 4, kind: input, shape index: {}]   ;;  %s2382_s5 = inlined_call_operand.vmem [shape: bf16[128,128], index: 5, kind: input, shape index: {}]   ;;  %s2383_s6 = inlined_call_operand.vmem [shape: f32[1,128], index: 6, kind: input, shape index: {}]   ;;  %s2384_s7 = inlined_call_operand.hbm [shape: bf16[256,128], index: 7, kind: output, shape index: {}]  }
   0x1   :  { %14 = vsyncpa [#allocation3 + $0x1], 0  ;;  %s2005_s24 = smov 0   ;;  %s2007_s25 = smov 0  }
   0x2   :  { %s2009_s26 = smov 0   ;;  %s2011_s27 = smov 0  }
   0x3 LB: > { %s2026_s28 = sadd.s32 4294967295, %s1960_s27   ;;  %s1460_s29 = sadd.s32 4294967294, %s1960_s27   ;;  %s1960_s27 = sphi %s2011_s27, %s2390_s27   ;;  %s1956_s26 = sphi %s2009_s26, %s2389_s26   ;;  %s1952_s25 = sphi %s2007_s25, %s2388_s25   ;;  %s1948_s24 = sphi %s2005_s24, %s2387_s24  }
   0x4   : > { %s2030_s30 = sadd.s32 1, %s1960_s27   ;;  %s179_s8 = sadd.s32 1, %s1956_s26 }
   0x5   : > { %s176_s9 = ssub.s32 %s1960_s27, %s2030_s30  ;;  %p189_p0 = scmp.ne.s32.totalorder %s1956_s26, %s1952_s25 }
   0x6   : > { %p177_p1 = scmp.eq.s32.totalorder %s176_s9, 0  ;;  %p190_p2 = scmp.eq.s32.totalorder %s2026_s28, 3 }
   0x7   : > { %p195_p3 = scmp.ne.s32.totalorder %s1952_s25, %s1948_s24  ;;  %p196_p4 = scmp.eq.s32.totalorder %s1460_s29, 3 }
   0x8   : > { %s2041_s10 = scalar_select %p177_p1, %s1956_s26, %s179_s8  }
   0x9   : > { %p2043_p5 = por %p190_p2, %p189_p0  ;;  %p2047_p6 = por %p196_p4, %p195_p3 }
   0xa   : > { %p1463_p7 = scmp.ge.s32.totalorder %s1960_s27, 1  ;;  %p242_p8 = scmp.lt.s32.totalorder %s1960_s27, 5 }
   0xc   : > { %p243_p9 = pnand %p1463_p7, %p242_p8 }
   0xd   : > { %v1833_v0 = vld [vmem:[%s2378_s1 + $0x40] sm:$0xff] (!%p243_p9)   ;;  %v1837_v4 = vld [vmem:[%s2378_s1 + $0x48] sm:$0xff] (!%p243_p9)   ;;  %v1841_v8 = vld [vmem:[%s2378_s1 + $0x50] sm:$0xff] (!%p243_p9)   ;;  %s1465_s13 = sshll.u32 (!%p243_p9), %s2026_s28, 3  ;;  %vm767_vm0 = vcmask (!%p243_p9), 130048   ;;  %s272_s18 = sand.u32 (!%p243_p9), 1, %s1952_s25  }
   0xe   : > { %246 = sbr.rel (%p243_p9) target bundleno = 785 (0x311), region = 48  ;;  %v1834_v1 = vld [vmem:[%s2378_s1] sm:$0xff] (!%p243_p9)   ;;  %1584 = vmatprep.subr.bf16.mxu0 (!%p243_p9), %v1833_v0  ;;  %v1838_v5 = vld [vmem:[%s2378_s1 + $0x8] sm:$0xff] (!%p243_p9)   ;;  %v1842_v9 = vld [vmem:[%s2378_s1 + $0x10] sm:$0xff] (!%p243_p9)   ;;  %p276_p10 = scmp.lt.s32.totalorder (!%p243_p9), %s1465_s13, 31 }
   0xf   : > { %v1835_v2 = vld [vmem:[%s2378_s1 + $0xc0] sm:$0xff] (!%p243_p9)   ;;  %1585 = vmatpush3.bf16.msra.mxu0 (!%p243_p9), %v1834_v1  ;;  %v1839_v6 = vld [vmem:[%s2378_s1 + $0xc8] sm:$0xff] (!%p243_p9)   ;;  %v1843_v10 = vld [vmem:[%s2378_s1 + $0xd0] sm:$0xff] (!%p243_p9)   ;;  %s1560_s22 = sshll.u32 (!%p243_p9), %s2026_s28, 9  ;;  %s2336_s9 = scalar_lea.sflag (!%p243_p9), [#allocation3], %s272_s18 }
  0x10   : > { %v1836_v3 = vld [vmem:[%s2378_s1 + $0x80] sm:$0xff] (!%p243_p9)   ;;  %1624 = vmatprep.subr.bf16.mxu1 (!%p243_p9), %v1835_v2  ;;  %1586 = vmatprep.subr.bf16.mxu0 (!%p243_p9), %v1837_v4  ;;  %v1840_v7 = vld [vmem:[%s2378_s1 + $0x88] sm:$0xff] (!%p243_p9)   ;;  %v1844_v11 = vld [vmem:[%s2378_s1 + $0x90] sm:$0xff] (!%p243_p9)   ;;  %s1962_s14 = smov (!%p243_p9), [#allocation2]  }
  0x11   : > { %1625 = vmatpush3.bf16.msra.mxu1 (!%p243_p9), %v1836_v3  ;;  %v1845_v12 = vld [vmem:[%s2378_s1 + $0x58] sm:$0xff] (!%p243_p9)   ;;  %v1849_v16 = vld [vmem:[%s2378_s1 + $0x60] sm:$0xff] (!%p243_p9)   ;;  %v1853_v20 = vld [vmem:[%s2378_s1 + $0x68] sm:$0xff] (!%p243_p9)  }
  0x12   : > { %1626 = vmatprep.subr.bf16.mxu1 (!%p243_p9), %v1839_v6  ;;  %v1846_v13 = vld [vmem:[%s2378_s1 + $0x18] sm:$0xff] (!%p243_p9)   ;;  %v1850_v17 = vld [vmem:[%s2378_s1 + $0x20] sm:$0xff] (!%p243_p9)   ;;  %v1854_v21 = vld [vmem:[%s2378_s1 + $0x28] sm:$0xff] (!%p243_p9)  }
  0x13   : > { %1587 = vmatpush3.bf16.msra.mxu0 (!%p243_p9), %v1838_v5  ;;  %v1847_v14 = vld [vmem:[%s2378_s1 + $0xd8] sm:$0xff] (!%p243_p9)   ;;  %v1851_v18 = vld [vmem:[%s2378_s1 + $0xe0] sm:$0xff] (!%p243_p9)   ;;  %v1855_v22 = vld [vmem:[%s2378_s1 + $0xe8] sm:$0xff] (!%p243_p9)  }
  0x14   : > { %1588 = vmatprep.subr.bf16.mxu0 (!%p243_p9), %v1841_v8  ;;  %v1848_v15 = vld [vmem:[%s2378_s1 + $0x98] sm:$0xff] (!%p243_p9)   ;;  %v1852_v19 = vld [vmem:[%s2378_s1 + $0xa0] sm:$0xff] (!%p243_p9)   ;;  %v1856_v23 = vld [vmem:[%s2378_s1 + $0xa8] sm:$0xff] (!%p243_p9)  }
  0x15   : > { %1627 = vmatpush3.bf16.msra.mxu1 %v1840_v7  ;;  %s2392_s13 = smov (!%p276_p10, %s1465_s13), 31  ;;  %v1857_v24 = vld [vmem:[%s2378_s1 + $0x70] sm:$0xff]   ;;  %v1861_v28 = vld [vmem:[%s2378_s1 + $0x78] sm:$0xff]   ;;  %v1865_v38 = vld [vmem:[%s2378_s1 + $0x140] sm:$0xff]  }
  0x16   : > { %1628 = vmatprep.subr.bf16.mxu1 %v1843_v10  ;;  %s1791_s23 = smul.u32 56, %s2392_s13  ;;  %v1858_v25 = vld [vmem:[%s2378_s1 + $0x30] sm:$0xff]   ;;  %v1862_v29 = vld [vmem:[%s2378_s1 + $0x38] sm:$0xff]   ;;  %v1866_v42 = vld [vmem:[%s2378_s1 + $0x100] sm:$0xff]   ;;  %s1464_s13 = sshll.u32 %s272_s18, 5 }
  0x17   : > { %1589 = vmatpush3.bf16.msra.mxu0 %v1842_v9  ;;  %v1859_v26 = vld [vmem:[%s2378_s1 + $0xf0] sm:$0xff]   ;;  %v1863_v30 = vld [vmem:[%s2378_s1 + $0xf8] sm:$0xff]   ;;  %v1867_v46 = vld [vmem:[%s2378_s1 + $0x148] sm:$0xff]   ;;  %s274_s19 = scalar_lea.vmem [#allocation2], %s1464_s13 }
  0x18   : > { %1590 = vmatprep.subr.bf16.mxu0 %v1845_v12  ;;  %v1860_v27 = vld [vmem:[%s2378_s1 + $0xb0] sm:$0xff]   ;;  %s2144_s20 = scalar_lea.vmem %s2377_s0, %s1791_s23  ;;  %v1864_v34 = vld [vmem:[%s2378_s1 + $0xb8] sm:$0xff]   ;;  %v1868_v47 = vld [vmem:[%s2378_s1 + $0x108] sm:$0xff]   ;;  %s1398_s21 = sshll.u32 %s274_s19, 4  ;;  %s2327_s21 = int_to_ptr.vmem [resolvable:$true] %s1398_s21 }
  0x19   : > { %1629 = vmatpush3.bf16.msra.mxu1 %v1844_v11  ;;  %v285_v31 = vld [vmem:[%s2144_s20 + $0x8] sm:$0xff]  ;;  %v292_v32 = vld [vmem:[%s2144_s20 + $0x40] sm:$0xff]  ;;  %v291_v36 = vld [vmem:[%s2144_s20 + $0x38] sm:$0xff]  ;;  %s2332_s23 = scalar_lea.hbm %s2384_s7, %s1560_s22  ;;  %s1898_s28 = scalar_lea.vmem %s2327_s21, 512 }
  0x1a   : > { %1630 = vmatprep.subr.bf16.mxu1 %v1847_v14  ;;  %v341_v33 = vpack.c.bf16 %v292_v32, %v285_v31  ;;  %v284_v35 = vld [vmem:[%s2144_s20] sm:$0xff]  ;;  %v287_v39 = vld [vmem:[%s2144_s20 + $0x18] sm:$0xff]  ;;  %v294_v40 = vld [vmem:[%s2144_s20 + $0x50] sm:$0xff]  ;;  %p1899_p11 = scmp.ne.s32.totalorder %s2327_s21, %s1898_s28 }
  0x1b   : > { %1591 = vmatpush3.bf16.msra.mxu0 %v1846_v13  ;;  %v340_v37 = vpack.c.bf16 %v291_v36, %v284_v35  ;;  %v343_v41 = vpack.c.bf16 %v294_v40, %v287_v39  ;;  %v286_v43 = vld [vmem:[%s2144_s20 + $0x10] sm:$0xff]  ;;  %v293_v44 = vld [vmem:[%s2144_s20 + $0x48] sm:$0xff]  ;;  %v299_v48 = vld [vmem:[%s2144_s20 + $0x78] sm:$0xff] }
  0x1c   : > { %1592 = vmatprep.subr.bf16.mxu0 %v1849_v16  ;;  %812 = vmatprep.mubr.bf16.mxu0 %v341_v33  ;;  %v342_v45 = vpack.c.bf16 %v293_v44, %v286_v43  ;;  %v306_v49 = vld [vmem:[%s2144_s20 + $0xb0] sm:$0xff]  ;;  %v305_v51 = vld [vmem:[%s2144_s20 + $0xa8] sm:$0xff]  ;;  %v308_v56 = vld [vmem:[%s2144_s20 + $0xc0] sm:$0xff]  ;;  %p1900_p12 = pnand %p1899_p11, %p2043_p5 }
  0x1d   : > { %1631 = vmatpush3.bf16.msra.mxu1 %v1848_v15  ;;  %877 = vmatprep.mubr.bf16.mxu1 %v343_v41  ;;  %v298_v50 = vld [vmem:[%s2144_s20 + $0x70] sm:$0xff]  ;;  %v348_v52 = vpack.c.bf16 %v306_v49, %v299_v48  ;;  %v301_v55 = vld [vmem:[%s2144_s20 + $0x88] sm:$0xff]  ;;  %v300_v59 = vld [vmem:[%s2144_s20 + $0x80] sm:$0xff] }
  0x1e   : > { %1632 = vmatprep.subr.bf16.mxu1 %v1851_v18  ;;  %v347_v53 = vpack.c.bf16 %v305_v51, %v298_v50  ;;  %v1869_v54 = vld [vmem:[%s2378_s1 + $0x150] sm:$0xff]   ;;  %v350_v57 = vpack.c.bf16 %v308_v56, %v301_v55  ;;  %v307_v60 = vld [vmem:[%s2144_s20 + $0xb8] sm:$0xff]  ;;  %v313_v0 = vld [vmem:[%s2144_s20 + $0xe8] sm:$0xff]  ;;  %p1901_p13 = pneg %p1900_p12 }
  0x1f   : > { %1593 = vmatpush3.bf16.msra.mxu0 %v1850_v17  ;;  %v1870_v58 = vld [vmem:[%s2378_s1 + $0x110] sm:$0xff]   ;;  %v349_v61 = vpack.c.bf16 %v307_v60, %v300_v59  ;;  %v1871_v62 = vld [vmem:[%s2378_s1 + $0x158] sm:$0xff]   ;;  %v320_v1 = vld [vmem:[%s2144_s20 + $0x120] sm:$0xff] }
  0x20   : > { %1594 = vmatprep.subr.bf16.mxu0 %v1853_v20  ;;  %v1872_v63 = vld [vmem:[%s2378_s1 + $0x118] sm:$0xff]   ;;  %v355_v2 = vpack.c.bf16 %v320_v1, %v313_v0  ;;  %v312_v3 = vld [vmem:[%s2144_s20 + $0xe0] sm:$0xff]  ;;  %v322_v8 = vld [vmem:[%s2144_s20 + $0x130] sm:$0xff] }
  0x21   : > { %1633 = vmatpush3.bf16.msra.mxu1 %v1852_v19  ;;  %v319_v4 = vld [vmem:[%s2144_s20 + $0x118] sm:$0xff]  ;;  %v1873_v5 = vld [vmem:[%s2378_s1 + $0x160] sm:$0xff]   ;;  %v314_v11 = vld [vmem:[%s2144_s20 + $0xf0] sm:$0xff] }
  0x22   : > { %1634 = vmatprep.subr.bf16.mxu1 %v1855_v22  ;;  %v315_v6 = vld [vmem:[%s2144_s20 + $0xf8] sm:$0xff]  ;;  %v354_v7 = vpack.c.bf16 %v319_v4, %v312_v3  ;;  %v1874_v10 = vld [vmem:[%s2378_s1 + $0x120] sm:$0xff]   ;;  %v321_v12 = vld [vmem:[%s2144_s20 + $0x128] sm:$0xff] }
  0x23   : > { %1595 = vmatpush3.bf16.msra.mxu0 %v1854_v21  ;;  %v357_v9 = vpack.c.bf16 %v322_v8, %v315_v6  ;;  %v1875_v13 = vld [vmem:[%s2378_s1 + $0x180] sm:$0xff]   ;;  %v356_v14 = vpack.c.bf16 %v321_v12, %v314_v11  ;;  %v1876_v15 = vld [vmem:[%s2378_s1 + $0x168] sm:$0xff]   ;;  %v327_v17 = vld [vmem:[%s2144_s20 + $0x158] sm:$0xff] }
  0x24   : > { %1596 = vmatprep.subr.bf16.mxu0 %v1857_v24  ;;  %v1877_v16 = vld [vmem:[%s2378_s1 + $0x128] sm:$0xff]   ;;  %v334_v18 = vld [vmem:[%s2144_s20 + $0x190] sm:$0xff]  ;;  %v336_v24 = vld [vmem:[%s2144_s20 + $0x1a0] sm:$0xff] }
  0x25   : > { %1635 = vmatpush3.bf16.msra.mxu1 %v1856_v23  ;;  %v326_v19 = vld [vmem:[%s2144_s20 + $0x150] sm:$0xff]  ;;  %v362_v20 = vpack.c.bf16 %v334_v18, %v327_v17  ;;  %v333_v21 = vld [vmem:[%s2144_s20 + $0x188] sm:$0xff]  ;;  %v1881_v33 = vld [vmem:[%s2378_s1 + $0x138] sm:$0xff]  }
  0x26   : > { %1636 = vmatprep.subr.bf16.mxu1 %v1859_v26  ;;  %v1878_v22 = vld [vmem:[%s2378_s1 + $0x170] sm:$0xff]   ;;  %v329_v23 = vld [vmem:[%s2144_s20 + $0x168] sm:$0xff]  ;;  %v288_v35 = vld [vmem:[%s2144_s20 + $0x20] sm:$0xff] }
  0x27   : > { %1597 = vmatpush3.bf16.msra.mxu0 %v1858_v25  ;;  %v361_v25 = vpack.c.bf16 %v333_v21, %v326_v19  ;;  %v364_v26 = vpack.c.bf16 %v336_v24, %v329_v23  ;;  %v289_v32 = vld [vmem:[%s2144_s20 + $0x28] sm:$0xff]  ;;  %v303_v41 = vld [vmem:[%s2144_s20 + $0x98] sm:$0xff]  ;;  %v304_v44 = vld [vmem:[%s2144_s20 + $0xa0] sm:$0xff] }
  0x28   : > { %1598 = vmatprep.subr.bf16.mxu0 %v1861_v28  ;;  %v328_v28 = vld [vmem:[%s2144_s20 + $0x160] sm:$0xff]  ;;  %v297_v39 = vld [vmem:[%s2144_s20 + $0x68] sm:$0xff]  ;;  %v302_v50 = vld [vmem:[%s2144_s20 + $0x90] sm:$0xff] }
  0x29   : > { %1637 = vmatpush3.bf16.msra.mxu1 %v1860_v27  ;;  %v1879_v27 = vld [vmem:[%s2378_s1 + $0x130] sm:$0xff]   ;;  %v325_v48 = vld [vmem:[%s2144_s20 + $0x148] sm:$0xff]  ;;  %v332_v55 = vld [vmem:[%s2144_s20 + $0x180] sm:$0xff] }
  0x2a   : > { %1638 = vmatprep.subr.bf16.mxu1 %v1863_v30  ;;  %v1880_v30 = vld [vmem:[%s2378_s1 + $0x178] sm:$0xff]   ;;  %v309_v51 = vld [vmem:[%s2144_s20 + $0xc8] sm:$0xff]  ;;  %v316_v59 = vld [vmem:[%s2144_s20 + $0x100] sm:$0xff] }
  0x2b   : > { %1599 = vmatpush3.bf16.msra.mxu0 %v1862_v29  ;;  %v335_v29 = vld [vmem:[%s2144_s20 + $0x198] sm:$0xff]  ;;  %v337_v3 = vld [vmem:[%s2144_s20 + $0x1a8] sm:$0xff]  ;;  %v1888_v11 = vld [vmem:[%s2380_s3 + $0x30] sm:$0xff]  }
  0x2c   : > { %1664 = vmatprep.subr.bf16.mxu0 %v1865_v38  ;;  %v363_v31 = vpack.c.bf16 %v335_v29, %v328_v28  ;;  %v290_v38 = vld [vmem:[%s2144_s20 + $0x30] sm:$0xff]  ;;  %v339_v56 = vld [vmem:[%s2144_s20 + $0x1b8] sm:$0xff]  ;;  %v1883_v6 = vld [vmem:[%s2380_s3 + $0x8] sm:$0xff]  }
  0x2d   : > { %1639 = vmatpush3.bf16.msra.mxu1 %v1864_v34  ;;  %v296_v34 = vld [vmem:[%s2144_s20 + $0x60] sm:$0xff]  ;;  %v346_v40 = vpack.c.bf16 %v297_v39, %v290_v38  ;;  %v323_v60 = vld [vmem:[%s2144_s20 + $0x138] sm:$0xff]  ;;  %v1895_v18 = vld [vmem:[%s2382_s5 + $0x28] sm:$0xff]  }
  0x2e   : > { %813 = vmatmul.mubr.bf16.vlgmr.msra.gmra.mrb[0].mxu0 %v340_v37  ;;  %1733 = vmatprep.subr.bf16.mxu1 %v1875_v13  ;;  %v345_v36 = vpack.c.bf16 %v296_v34, %v289_v32  ;;  %v295_v37 = vld [vmem:[%s2144_s20 + $0x58] sm:$0xff]  ;;  %v358_v0 = vpack.c.bf16 %v323_v60, %v316_v59  ;;  %v1894_v17 = vld [vmem:[%s2382_s5 + $0x20] sm:$0xff]  }
  0x2f   : > { %1665 = vmatpush3.bf16.msra.mxu0 %v1866_v42  ;;  %820 = vmatprep.mubr.bf16.mxu0 %v348_v52  ;;  %v310_v42 = vld [vmem:[%s2144_s20 + $0xd0] sm:$0xff]  ;;  %v344_v43 = vpack.c.bf16 %v295_v37, %v288_v35  ;;  %v317_v52 = vld [vmem:[%s2144_s20 + $0x108] sm:$0xff]  ;;  %v1885_v8 = vld [vmem:[%s2380_s3 + $0x18] sm:$0xff]  }
  0x30   : > { %878 = vmatmul.mubr.bf16.vlgmr.msra.gmra.mrb[0].mxu1 %v342_v45  ;;  %1666 = vmatprep.subr.bf16.mxu0 %v1867_v46  ;;  %v311_v45 = vld [vmem:[%s2144_s20 + $0xd8] sm:$0xff]  ;;  %v352_v46 = vpack.c.bf16 %v310_v42, %v303_v41 }
  0x31   : > { %885 = vmatprep.mubr.bf16.mxu1 %v350_v57  ;;  %1734 = vmatpush3.bf16.msra.mxu1 %v1875_v13  ;;  %v353_v49 = vpack.c.bf16 %v311_v45, %v304_v44  ;;  %v351_v57 = vpack.c.bf16 %v309_v51, %v302_v50  ;;  %v1889_v12 = vld [vmem:[%s2380_s3 + $0x38] sm:$0xff]   ;;  %v1890_v13 = vld [vmem:[%s2382_s5] sm:$0xff]  }
  0x32   : > { %1767 = vmatprep.subr.bf16.mxu1 %v1890_v13 }
  0x33   : > { %1667 = vmatpush3.bf16.msra.mxu0 %v1868_v47  ;;  %v318_v47 = vld [vmem:[%s2144_s20 + $0x110] sm:$0xff] }
  0x34   : > { %1668 = vmatprep.subr.bf16.mxu0 %v1869_v54  ;;  %v360_v54 = vpack.c.bf16 %v325_v48, %v318_v47 }
  0x36   : > { %821 = vmatmul.mubr.bf16.gmra.mrb[4].mxu0 %v347_v53  ;;  %v324_v53 = vld [vmem:[%s2144_s20 + $0x140] sm:$0xff] }
  0x37   : > { %1669 = vmatpush3.bf16.msra.mxu0 %v1870_v58  ;;  %828 = vmatprep.mubr.bf16.mxu0 %v355_v2  ;;  %v359_v58 = vpack.c.bf16 %v324_v53, %v317_v52  ;;  %v330_v2 = vld [vmem:[%s2144_s20 + $0x170] sm:$0xff] }
  0x38   : > { %1670 = vmatprep.subr.bf16.mxu0 %v1871_v62  ;;  %886 = vmatmul.mubr.bf16.gmra.mrb[4].mxu1 %v349_v61  ;;  %v367_v61 = vpack.c.bf16 %v339_v56, %v332_v55  ;;  %v331_v62 = vld [vmem:[%s2144_s20 + $0x178] sm:$0xff]  ;;  %v365_v4 = vpack.c.bf16 %v337_v3, %v330_v2 }
  0x39   : > { %893 = vmatprep.mubr.bf16.mxu1 %v357_v9  ;;  %v1886_v9 = vld [vmem:[%s2380_s3 + $0x20] sm:$0xff]  }
  0x3b   : > { %1671 = vmatpush3.bf16.msra.mxu0 %v1872_v63  ;;  %v338_v63 = vld [vmem:[%s2144_s20 + $0x1b0] sm:$0xff]  ;;  %s1902_s20 = sshll.u32 %s1962_s14, 4  ;;  %s1903_s20 = int_to_ptr.vmem [resolvable:$false] %s1902_s20 }
  0x3c   : > { %1672 = vmatprep.subr.bf16.mxu0 %v1873_v5  ;;  %v366_v1 = vpack.c.bf16 %v338_v63, %v331_v62  ;;  %v1882_v5 = vld [vmem:[%s2380_s3] sm:$0xff]   ;;  %s1904_s15 = scalar_lea.vmem %s1903_s20, 1024  ;;  %p1905_p0 = scmp.lt.s32.totalorder %s2327_s21, %s1903_s20 }
  0x3d   : > { %p1906_p1 = scmp.lt.s32.totalorder %s1904_s15, %s1898_s28 }
  0x3e   : > { %829 = vmatmul.mubr.bf16.gmra.mrb[8].mxu0 %v354_v7  ;;  %v1884_v7 = vld [vmem:[%s2380_s3 + $0x10] sm:$0xff]  }
  0x3f   : > { %1673 = vmatpush3.bf16.msra.mxu0 %v1874_v10  ;;  %836 = vmatprep.mubr.bf16.mxu0 %v362_v20  ;;  %v1887_v10 = vld [vmem:[%s2380_s3 + $0x28] sm:$0xff]   ;;  %v1467_v20 = vld [vmem:[%s2379_s2] ss:$0 sm:$0xff]  ;;  %p1907_p2 = por %p1906_p1, %p1905_p0 }
  0x40   : > { %1674 = vmatprep.subr.bf16.mxu0 %v1876_v15  ;;  %894 = vmatmul.mubr.bf16.gmra.mrb[8].mxu1 %v356_v14  ;;  %v1891_v14 = vld [vmem:[%s2382_s5 + $0x8] sm:$0xff]   ;;  %v1892_v15 = vld [vmem:[%s2382_s5 + $0x10] sm:$0xff]  }
  0x41   : > { %901 = vmatprep.mubr.bf16.mxu1 %v364_v26  ;;  %p1908_p3 = pnand %p1907_p2, %p1901_p13 }
  0x43   : > { %1675 = vmatpush3.bf16.msra.mxu0 %v1877_v16  ;;  %v1893_v16 = vld [vmem:[%s2382_s5 + $0x18] sm:$0xff]  }
  0x44   : > { %1676 = vmatprep.subr.bf16.mxu0 %v1878_v22 }
  0x46   : > { %837 = vmatmul.mubr.bf16.gmra.mrb[12].mxu0 %v361_v25 }
  0x47   : > { %1677 = vmatpush3.bf16.msra.mxu0 %v1879_v27  ;;  %942 = vmatprep.mubr.bf16.mxu0 %v345_v36 }
  0x48   : > { %1678 = vmatprep.subr.bf16.mxu0 %v1880_v30  ;;  %902 = vmatmul.mubr.bf16.gmra.mrb[12].mxu1 %v363_v31 }
  0x49   : > { %1735 = vmatprep.mubr.msk.bf16.mxu1 %vm767_vm0, %v346_v40 }
  0x4b   : > { %1679 = vmatpush3.bf16.msra.mxu0 %v1881_v33 }
  0x4c   : > { %1743 = vmatprep.subr.bf16.mxu0 %v1882_v5 }
  0x4e   : > { %943 = vmatmul.mubr.bf16.vlgmr.msra.gmra.mrb[16].mxu0 %v344_v43 }
  0x4f   : > { %950 = vmatprep.mubr.bf16.mxu0 %v352_v46  ;;  %1744 = vmatpush3.bf16.msra.mxu0 %v1882_v5 }
  0x50   : > { %1736 = vmatmul.mubr.msk.bf16.vlgmr.msra.gmra.mrb[16].mxu1 %vm767_vm0, %v353_v49  ;;  %1745 = vmatprep.subr.bf16.mxu0 %v1883_v6 }
  0x51   : > { %1739 = vmatprep.mubr.msk.bf16.mxu1 %vm767_vm0, %v360_v54  ;;  %1768 = vmatpush3.bf16.msra.mxu1 %v1890_v13 }
  0x52   : > { %1769 = vmatprep.subr.bf16.mxu1 %v1891_v14 }
  0x53   : > { %1746 = vmatpush3.bf16.msra.mxu0 %v1883_v6 }
  0x54   : > { %1747 = vmatprep.subr.bf16.mxu0 %v1884_v7 }
  0x55   : > { %1770 = vmatpush3.bf16.msra.mxu1 %v1891_v14 }
  0x56   : > { %951 = vmatmul.mubr.bf16.gmra.mrb[20].mxu0 %v351_v57  ;;  %1771 = vmatprep.subr.bf16.mxu1 %v1892_v15 }
  0x57   : > { %958 = vmatprep.mubr.bf16.mxu0 %v359_v58  ;;  %1748 = vmatpush3.bf16.msra.mxu0 %v1884_v7 }
  0x58   : > { %1740 = vmatmul.mubr.msk.bf16.gmra.mrb[20].mxu1 %vm767_vm0, %v367_v61  ;;  %1749 = vmatprep.subr.bf16.mxu0 %v1885_v8 }
  0x59   : > { %1772 = vmatpush3.bf16.msra.mxu1 %v1892_v15 }
  0x5a   : > { %1773 = vmatprep.subr.bf16.mxu1 %v1893_v16 }
  0x5b   : > { %1750 = vmatpush3.bf16.msra.mxu0 %v1885_v8 }
  0x5c   : > { %1751 = vmatprep.subr.bf16.mxu0 %v1886_v9 }
  0x5d   : > { %1774 = vmatpush3.bf16.msra.mxu1 %v1893_v16 }
  0x5e   : > { %959 = vmatmul.mubr.bf16.gmra.mrb[24].mxu0 %v358_v0  ;;  %1775 = vmatprep.subr.bf16.mxu1 %v1894_v17 }
  0x5f   : > { %966 = vmatprep.mubr.bf16.mxu0 %v366_v1  ;;  %1752 = vmatpush3.bf16.msra.mxu0 %v1886_v9 }
  0x60   : > { %1753 = vmatprep.subr.bf16.mxu0 %v1887_v10 }
  0x61   : > { %1776 = vmatpush3.bf16.msra.mxu1 %v1894_v17 }
  0x62   : > { %1777 = vmatprep.subr.bf16.mxu1 %v1895_v18 }
  0x63   : > { %1754 = vmatpush3.bf16.msra.mxu0 %v1887_v10 }
  0x64   : > { %1755 = vmatprep.subr.bf16.mxu0 %v1888_v11 }
  0x65   : > { %1778 = vmatpush3.bf16.msra.mxu1 %v1895_v18 }
  0x66   : > { %967 = vmatmul.mubr.bf16.gmra.mrb[28].mxu0 %v365_v4 }
  0x67   : > { %1756 = vmatpush3.bf16.msra.mxu0 %v1888_v11 }
  0x68   : > { %1757 = vmatprep.subr.bf16.mxu0 %v1889_v12 }
  0x6b   : > { %1758 = vmatpush3.bf16.msra.mxu0 %v1889_v12 }
 0x101   : > { %v1600_v19 = vpop.f32.mrb[0].mxu0 }
 0x102   : > { %v1601_v21 = vpop.f32.mrb[1].mxu0 }
 0x103   : > { %v1602_v22 = vadd.f32 %v1601_v21, %v1600_v19  ;;  %v1603_v23 = vpop.f32.mrb[2].mxu0  ;;  %v1640_v24 = vpop.f32.mrb[0].mxu1 }
 0x104   : > { %v1604_v25 = vpop.f32.mrb[3].mxu0  ;;  %v1641_v28 = vpop.f32.mrb[1].mxu1 }
 0x105   : > { %v815_v26 = vadd.f32 %v1602_v22, %v1467_v20  ;;  %v1605_v27 = vadd.f32 %v1604_v25, %v1603_v23  ;;  %v1642_v29 = vadd.f32 %v1641_v28, %v1640_v24  ;;  %v1643_v30 = vpop.f32.mrb[2].mxu1 }
 0x106   : > { %v1644_v32 = vpop.f32.mrb[3].mxu1 }
 0x107   : > { %v818_v31 = vadd.f32 %v1605_v27, %v1467_v20  ;;  %v880_v33 = vadd.f32 %v1642_v29, %v815_v26  ;;  %v1645_v34 = vadd.f32 %v1644_v32, %v1643_v30 }
 0x109   : > { %v1606_v35 = vpop.f32.mrb[4].mxu0  ;;  %v883_v36 = vadd.f32 %v1645_v34, %v818_v31 }
 0x10a   : > { %v1607_v37 = vpop.f32.mrb[5].mxu0 }
 0x10b   : > { %v1608_v38 = vadd.f32 %v1607_v37, %v1606_v35  ;;  %v1609_v39 = vpop.f32.mrb[6].mxu0  ;;  %v1646_v40 = vpop.f32.mrb[4].mxu1 }
 0x10c   : > { %v1610_v41 = vpop.f32.mrb[7].mxu0  ;;  %v1647_v44 = vpop.f32.mrb[5].mxu1 }
 0x10d   : > { %v823_v42 = vadd.f32 %v1608_v38, %v1467_v20  ;;  %v1611_v43 = vadd.f32 %v1610_v41, %v1609_v39  ;;  %v1648_v45 = vadd.f32 %v1647_v44, %v1646_v40  ;;  %v1649_v46 = vpop.f32.mrb[6].mxu1 }
 0x10e   : > { %v1650_v48 = vpop.f32.mrb[7].mxu1 }
 0x10f   : > { %v826_v47 = vadd.f32 %v1611_v43, %v1467_v20  ;;  %v888_v49 = vadd.f32 %v1648_v45, %v823_v42  ;;  %v1651_v50 = vadd.f32 %v1650_v48, %v1649_v46 }
 0x111   : > { %v1612_v51 = vpop.f32.mrb[8].mxu0  ;;  %v891_v52 = vadd.f32 %v1651_v50, %v826_v47 }
 0x112   : > { %v1613_v53 = vpop.f32.mrb[9].mxu0 }
 0x113   : > { %v1614_v54 = vadd.f32 %v1613_v53, %v1612_v51  ;;  %v1615_v55 = vpop.f32.mrb[10].mxu0  ;;  %v1652_v56 = vpop.f32.mrb[8].mxu1 }
 0x114   : > { %v1616_v57 = vpop.f32.mrb[11].mxu0  ;;  %v1653_v60 = vpop.f32.mrb[9].mxu1 }
 0x115   : > { %v831_v58 = vadd.f32 %v1614_v54, %v1467_v20  ;;  %v1617_v59 = vadd.f32 %v1616_v57, %v1615_v55  ;;  %v1654_v61 = vadd.f32 %v1653_v60, %v1652_v56  ;;  %v1655_v62 = vpop.f32.mrb[10].mxu1 }
 0x116   : > { %v1656_v0 = vpop.f32.mrb[11].mxu1 }
 0x117   : > { %v834_v63 = vadd.f32 %v1617_v59, %v1467_v20  ;;  %v896_v1 = vadd.f32 %v1654_v61, %v831_v58  ;;  %v1657_v2 = vadd.f32 %v1656_v0, %v1655_v62 }
 0x119   : > { %v1618_v3 = vpop.f32.mrb[12].mxu0  ;;  %v899_v4 = vadd.f32 %v1657_v2, %v834_v63 }
 0x11a   : > { %v1619_v5 = vpop.f32.mrb[13].mxu0 }
 0x11b   : > { %v1620_v6 = vadd.f32 %v1619_v5, %v1618_v3  ;;  %v1621_v7 = vpop.f32.mrb[14].mxu0  ;;  %v1658_v8 = vpop.f32.mrb[12].mxu1 }
 0x11c   : > { %v1622_v9 = vpop.f32.mrb[15].mxu0  ;;  %v1659_v12 = vpop.f32.mrb[13].mxu1 }
 0x11d   : > { %v839_v10 = vadd.f32 %v1620_v6, %v1467_v20  ;;  %v1623_v11 = vadd.f32 %v1622_v9, %v1621_v7  ;;  %v1660_v13 = vadd.f32 %v1659_v12, %v1658_v8  ;;  %v1661_v14 = vpop.f32.mrb[14].mxu1 }
 0x11e   : > { %v1662_v16 = vpop.f32.mrb[15].mxu1 }
 0x11f   : > { %v842_v15 = vadd.f32 %v1623_v11, %v1467_v20  ;;  %v904_v17 = vadd.f32 %v1660_v13, %v839_v10  ;;  %v1663_v18 = vadd.f32 %v1662_v16, %v1661_v14 }
 0x121   : > { %v1680_v19 = vpop.f32.mrb[16].mxu0  ;;  %v907_v21 = vadd.f32 %v1663_v18, %v842_v15  ;;  %v1897_v18 = vld [vmem:[%s2382_s5 + $0x38] sm:$0xff]  }
 0x122   : > { %v1681_v22 = vpop.f32.mrb[17].mxu0 }
 0x123   : > { %v1682_v23 = vadd.f32 %v1681_v22, %v1680_v19  ;;  %v1683_v24 = vpop.f32.mrb[18].mxu0  ;;  %v1737_v26 = vpop.f32.mrb[16].mxu1 }
 0x124   : > { %v1684_v25 = vpop.f32.mrb[19].mxu0  ;;  %v1009_v29 = vpop.f32.mrb[17].mxu1 }
 0x125   : > { %v1685_v27 = vadd.f32 %v1684_v25, %v1683_v24  ;;  %v945_v28 = vadd.f32 %v1682_v23, %v880_v33  ;;  %v1738_v30 = vpop.f32.mrb[18].mxu1 }
 0x126   : > { %v1012_v34 = vpop.f32.mrb[19].mxu1 }
 0x127   : > { %v1010_v31 = vadd.f32 %v1009_v29, %v945_v28  ;;  %v948_v32 = vadd.f32 %v1685_v27, %v883_v36 }
 0x129   : > { %v1013_v35 = vadd.f32 %v1012_v34, %v948_v32  ;;  %v1686_v37 = vpop.f32.mrb[20].mxu0  ;;  %v1040_v38 = vmax.f32 %v1010_v31, 0.0 }
 0x12a   : > { %v1687_v20 = vpop.f32.mrb[21].mxu0 }
 0x12b   : > { %v1041_v39 = vmax.f32 %v1013_v35, 0.0  ;;  %v1688_v40 = vadd.f32 %v1687_v20, %v1686_v37  ;;  %v1689_v41 = vpop.f32.mrb[22].mxu0  ;;  %v1741_v43 = vpop.f32.mrb[20].mxu1 }
 0x12c   : > { %v1690_v42 = vpop.f32.mrb[23].mxu0  ;;  %v1025_v47 = vpop.f32.mrb[21].mxu1 }
 0x12d   : > { %v1048_v44 = vpack.c.bf16 %v1041_v39, %v1040_v38  ;;  %v953_v45 = vadd.f32 %v1688_v40, %v888_v49  ;;  %v1691_v46 = vadd.f32 %v1690_v42, %v1689_v41  ;;  %v1742_v48 = vpop.f32.mrb[22].mxu1 }
 0x12e   : > { %v1028_v51 = vpop.f32.mrb[23].mxu1 }
 0x12f   : > { %v1018_v33 = vadd.f32 %v1737_v26, %v953_v45  ;;  %v956_v50 = vadd.f32 %v1691_v46, %v891_v52  ;;  %1759 = vmatprep.mubr.bf16.mxu0 %v1048_v44 }
 0x131   : > { %v1021_v36 = vadd.f32 %v1738_v30, %v956_v50  ;;  %v1692_v53 = vpop.f32.mrb[24].mxu0  ;;  %v1042_v55 = vmax.f32 %v1018_v33, 0.0  ;;  %v1530_v33 = vld [vmem:[%s2383_s6] ss:$0 sm:$0xff] }
 0x132   : > { %v1693_v54 = vpop.f32.mrb[25].mxu0 }
 0x133   : > { %v1043_v56 = vmax.f32 %v1021_v36, 0.0  ;;  %v1694_v57 = vadd.f32 %v1693_v54, %v1692_v53  ;;  %v1695_v58 = vpop.f32.mrb[26].mxu0 }
 0x134   : > { %v1696_v59 = vpop.f32.mrb[27].mxu0 }
 0x135   : > { %v1049_v60 = vpack.c.bf16 %v1043_v56, %v1042_v55  ;;  %v1697_v61 = vadd.f32 %v1696_v59, %v1695_v58  ;;  %v961_v62 = vadd.f32 %v1694_v57, %v896_v1 }
 0x137   : > { %v1026_v63 = vadd.f32 %v1025_v47, %v961_v62  ;;  %1760 = vmatmul.mubr.bf16.vlgmr.msra.gmra.mrb[32].mxu0 %v1049_v60  ;;  %v964_v49 = vadd.f32 %v1697_v61, %v899_v4  ;;  %v1896_v4 = vld [vmem:[%s2382_s5 + $0x30] sm:$0xff]  }
 0x138   : > { %1779 = vmatprep.subr.bf16.mxu1 %v1896_v4 }
 0x139   : > { %v1029_v0 = vadd.f32 %v1028_v51, %v964_v49  ;;  %v1698_v2 = vpop.f32.mrb[28].mxu0  ;;  %v1044_v52 = vmax.f32 %v1026_v63, 0.0  ;;  %1780 = vmatpush3.bf16.msra.mxu1 %v1896_v4 }
 0x13a   : > { %v1699_v3 = vpop.f32.mrb[29].mxu0  ;;  %1781 = vmatprep.subr.bf16.mxu1 %v1897_v18 }
 0x13b   : > { %v1045_v5 = vmax.f32 %v1029_v0, 0.0  ;;  %v1700_v6 = vadd.f32 %v1699_v3, %v1698_v2  ;;  %v1701_v7 = vpop.f32.mrb[30].mxu0 }
 0x13c   : > { %v1702_v8 = vpop.f32.mrb[31].mxu0 }
 0x13d   : > { %v1050_v9 = vpack.c.bf16 %v1045_v5, %v1044_v52  ;;  %v969_v10 = vadd.f32 %v1700_v6, %v904_v17  ;;  %v1703_v11 = vadd.f32 %v1702_v8, %v1701_v7  ;;  %1782 = vmatpush3.bf16.msra.mxu1 %v1897_v18  ;;  %v1521_v17 = vld [vmem:[%s2381_s4] ss:$0 sm:$0xff] }
 0x13f   : > { %v1034_v12 = vadd.f32 %v1741_v43, %v969_v10  ;;  %v972_v13 = vadd.f32 %v1703_v11, %v907_v21  ;;  %1763 = vmatprep.mubr.bf16.mxu0 %v1050_v9 }
 0x141   : > { %v1037_v14 = vadd.f32 %v1742_v48, %v972_v13  ;;  %v1046_v15 = vmax.f32 %v1034_v12, 0.0 }
 0x143   : > { %v1047_v1 = vmax.f32 %v1037_v14, 0.0 }
 0x145   : > { %v1051_v16 = vpack.c.bf16 %v1047_v1, %v1046_v15 }
 0x147   : > { %1764 = vmatmul.mubr.bf16.gmra.mrb[36].mxu0 %v1051_v16 }
 0x20a   : > { %v1761_v19 = vpop.f32.mrb[32].mxu0 }
 0x20b   : > { %v1166_v21 = vadd.f32 %v1761_v19, %v1521_v17  ;;  %v1157_v22 = vpop.f32.mrb[33].mxu0 }
 0x20c   : > { %v1158_v23 = vadd.f32 %v1521_v17, %v1157_v22  ;;  %v1762_v24 = vpop.f32.mrb[34].mxu0 }
 0x20d   : > { %v1169_v25 = vadd.f32 %v1762_v24, %v1521_v17  ;;  %v1160_v26 = vpop.f32.mrb[35].mxu0  ;;  %v1190_v28 = vmax.f32 %v1166_v21, 0.0 }
 0x20e   : > { %v1161_v27 = vadd.f32 %v1521_v17, %v1160_v26  ;;  %v1188_v30 = vmax.f32 %v1158_v23, 0.0 }
 0x20f   : > { %v1191_v29 = vmax.f32 %v1169_v25, 0.0 }
 0x210   : > { %v1189_v31 = vmax.f32 %v1161_v27, 0.0 }
 0x211   : > { %v1197_v32 = vpack.c.bf16 %v1191_v29, %v1190_v28 }
 0x212   : > { %v1196_v34 = vpack.c.bf16 %v1189_v31, %v1188_v30 }
 0x214   : > { %1783 = vmatprep.mubr.bf16.mxu1 %v1196_v34 }
 0x215   : > { %1784 = vmatmul.mubr.bf16.vlgmr.msra.gmra.mrb[24].mxu1 %v1197_v32 }
 0x21a   : > { %v1765_v35 = vpop.f32.mrb[36].mxu0 }
 0x21b   : > { %v1182_v37 = vadd.f32 %v1765_v35, %v1521_v17  ;;  %v1173_v20 = vpop.f32.mrb[37].mxu0 }
 0x21c   : > { %v1174_v38 = vadd.f32 %v1521_v17, %v1173_v20  ;;  %v1766_v39 = vpop.f32.mrb[38].mxu0 }
 0x21d   : > { %v1185_v40 = vadd.f32 %v1766_v39, %v1521_v17  ;;  %v1176_v41 = vpop.f32.mrb[39].mxu0  ;;  %v1194_v43 = vmax.f32 %v1182_v37, 0.0 }
 0x21e   : > { %v1177_v42 = vadd.f32 %v1521_v17, %v1176_v41  ;;  %v1192_v45 = vmax.f32 %v1174_v38, 0.0 }
 0x21f   : > { %v1195_v44 = vmax.f32 %v1185_v40, 0.0 }
 0x220   : > { %v1193_v46 = vmax.f32 %v1177_v42, 0.0 }
 0x221   : > { %v1199_v47 = vpack.c.bf16 %v1195_v44, %v1194_v43 }
 0x222   : > { %v1198_v48 = vpack.c.bf16 %v1193_v46, %v1192_v45 }
 0x224   : > { %1787 = vmatprep.mubr.bf16.mxu1 %v1198_v48 }
 0x225   : > { %1788 = vmatmul.mubr.bf16.gmra.mrb[28].mxu1 %v1199_v47 }
 0x2e8   : > { %v1785_v50 = vpop.f32.mrb[24].mxu1 }
 0x2e9   : > { %v1314_v51 = vadd.f32 %v1785_v50, %v1530_v33  ;;  %v1305_v36 = vpop.f32.mrb[25].mxu1 }
 0x2ea   : > { %v1306_v53 = vadd.f32 %v1530_v33, %v1305_v36  ;;  %v1786_v54 = vpop.f32.mrb[26].mxu1 }
 0x2eb   : > { %v1317_v55 = vadd.f32 %v1786_v54, %v1530_v33  ;;  %v1308_v56 = vpop.f32.mrb[27].mxu1  ;;  %v1338_v58 = vmax.f32 %v1314_v51, 0.0 }
 0x2ec   : > { %v1309_v57 = vadd.f32 %v1530_v33, %v1308_v56  ;;  %v1336_v60 = vmax.f32 %v1306_v53, 0.0 }
 0x2ed   : > { %v1339_v59 = vmax.f32 %v1317_v55, 0.0 }
 0x2ee   : > { %v1337_v61 = vmax.f32 %v1309_v57, 0.0 }
 0x2ef   : > { %v1569_v62 = vpack.c.bf16 %v1339_v59, %v1338_v58 }
 0x2f0   : > { %v1564_v63 = vpack.c.bf16 %v1337_v61, %v1336_v60 }
 0x2f1   : > { %1581 = vst [vmem:[%s274_s19 + $0x8] sm:$0xff] %v1569_v62  }
 0x2f2   : > { %1565 = vst [vmem:[%s274_s19] sm:$0xff] %v1564_v63  }
 0x2f8   : > { %v1789_v49 = vpop.f32.mrb[28].mxu1 }
 0x2f9   : > { %v1330_v0 = vadd.f32 %v1789_v49, %v1530_v33  ;;  %v1321_v2 = vpop.f32.mrb[29].mxu1 }
 0x2fa   : > { %v1322_v3 = vadd.f32 %v1530_v33, %v1321_v2  ;;  %v1790_v52 = vpop.f32.mrb[30].mxu1 }
 0x2fb   : > { %v1333_v5 = vadd.f32 %v1790_v52, %v1530_v33  ;;  %v1324_v6 = vpop.f32.mrb[31].mxu1  ;;  %v1342_v8 = vmax.f32 %v1330_v0, 0.0 }
 0x2fc   : > { %v1325_v7 = vadd.f32 %v1530_v33, %v1324_v6  ;;  %v1340_v10 = vmax.f32 %v1322_v3, 0.0 }
 0x2fd   : > { %v1343_v9 = vmax.f32 %v1333_v5, 0.0 }
 0x2fe   : > { %v1341_v11 = vmax.f32 %v1325_v7, 0.0 }
 0x2ff   : > { %v1579_v12 = vpack.c.bf16 %v1343_v9, %v1342_v8 }
 0x300   : > { %v1574_v13 = vpack.c.bf16 %v1341_v11, %v1340_v10 }
 0x301   : > { %1583 = vst [vmem:[%s274_s19 + $0x18] sm:$0xff] %v1579_v12  }
 0x302   : > { %1582 = vst [vmem:[%s274_s19 + $0x10] sm:$0xff] %v1574_v13  }
 0x303   : > { %1911 = shalt.err (!%p1908_p3)
}
 0x304   : > { %s1912_s16 = scalar_lea.hbm %s2332_s23, 512  ;;  %s1916_s13 = scalar_lea.hbm %s2384_s7, 2048 }
 0x305   : > { %p1913_p4 = scmp.ne.s32.totalorder %s2332_s23, %s1912_s16  ;;  %p1917_p9 = scmp.lt.u32.totalorder %s2332_s23, %s2384_s7 }
 0x306   : > { %p1918_p10 = scmp.lt.u32.totalorder %s1916_s13, %s1912_s16  ;;  %p1920_p12 = scmp.lt.u32.totalorder %s1912_s16, %s2332_s23 }
 0x307   : > { %p1914_p7 = pnand %p1913_p4, %p2043_p5 }
 0x308   : > { %p1919_p11 = por %p1918_p10, %p1917_p9 }
 0x309   : > { %p1915_p8 = pneg %p1914_p7 }
 0x30a   : > { %p1921_p13 = por %p1920_p12, %p1919_p11 }
 0x30c   : > { %p1922_p0 = pnand %p1921_p13, %p1915_p8 }
 0x30e   : > { %1925 = shalt.err (!%p1922_p0)
}
 0x30f   : > { %s1963_s29 = smov 64   ;;  %s1964_s8 = smov 4  }
 0x310   : > { %1792 = dma.vmem_to_hbm [thread:$0]  (%p2043_p5), %s2327_s21, 512, %s2332_s23, %s2336_s9, %s1963_s29, %s1963_s29, %s1964_s8  }
 0x311 PF: > { %p1798_p1 = scmp.ge.s32.totalorder %s1960_s27, 2  ;;  %s1413_s28 = sand.u32 1, %s1948_s24  }
 0x312   : > { %s1414_s14 = scalar_lea.sflag [#allocation3], %s1413_s28 }
 0x313   : > { %p1795_p2 = pnand %p1798_p1, %p2047_p6 }
 0x315   : > { %1943 = dma.done.wait (!%p1795_p2), %s1414_s14, 512  }
 0x316   : > { %1945 = vsyncadd (!%p1795_p2), %s1414_s14, 4294966784  ;;  %p17_p3 = scmp.ge.s32.totalorder %s2030_s30, 6   ;;  %s2387_s24 = smov %s1952_s25 }
 0x317   : > { %s2388_s25 = smov %s1956_s26  ;;  %s2389_s26 = smov %s2041_s10 }
 0x318   : > { %s2390_s27 = smov %s2030_s30  ;;  %19 = sbr.rel (!%p17_p3) target bundleno = 3 (0x3), region = 83 }
 0x31f   :  { %1419 = vsyncpa [#allocation3], 1 }
 0x320   :  { %1421 = vsyncpa [#allocation3 + $0x1], 1 }

</bundles_post_ra>
